<compile_context>
chip_gen: v6e
topology: v6e:2x2x1
jax: 0.10.0
libtpu: 0.0.40
codegen_flags: <defaults>
</compile_context>

<pallas_src>
import jax
import jax.numpy as jnp
from jax.experimental import pallas as pl
from jax.experimental.pallas import tpu as pltpu


# ---------------------------------------------------------------------------
# Kernel
# ---------------------------------------------------------------------------
def _make_pooling_kernel(use_cls: bool, use_max: bool, use_mean: bool, tb: int):
    """Builds a kernel specialized (at trace time) on the pooling flags."""

    def _stack_rows(rows):
        return rows[0] if len(rows) == 1 else jnp.concatenate(rows, axis=0)

    def kernel(tok_ref, mask_ref, w_ref, b_ref, out_ref,
               cls_acc, max_acc, sum_acc, cnt_acc):
        t = pl.program_id(1)
        nt = pl.num_programs(1)
        tt_local = tok_ref.shape[1]

        # ---- init running statistics on the first sequence tile -----------
        @pl.when(t == 0)
        def _init():
            if use_max:
                max_acc[...] = jnp.full(max_acc.shape, -1e9, dtype=max_acc.dtype)
            if use_mean:
                sum_acc[...] = jnp.zeros(sum_acc.shape, dtype=sum_acc.dtype)
                cnt_acc[...] = jnp.zeros(cnt_acc.shape, dtype=cnt_acc.dtype)

        if use_cls:
            @pl.when(t == 0)
            def _grab_cls():
                # Row 0 of sequence tile 0 is the CLS token.  Select it with a
                # one-hot (1, TT) @ (TT, D) MXU contraction (no middle-dim
                # squeeze / relayout needed).
                sel = (jax.lax.broadcasted_iota(jnp.int32, (1, tt_local), 1) == 0
                       ).astype(tok_ref.dtype)
                rows = [jnp.dot(sel, tok_ref[b],
                                preferred_element_type=jnp.float32)
                        for b in range(tb)]
                cls_acc[...] = _stack_rows(rows)

        mask = mask_ref[...]                                   # (TB, TT)

        # ---- per-tile accumulation -----------------------------------------
        if use_max:
            tok = tok_ref[...]                                 # stays in input dtype
            neg = jnp.asarray(-1e9, dtype=tok.dtype)
            masked = jnp.where(mask[:, :, None] != 0, tok, neg)
            tile_max = jnp.max(masked, axis=1)                 # (TB, D)
            max_acc[...] = jnp.maximum(max_acc[...], tile_max.astype(jnp.float32))

        if use_mean:
            # Masked sum over the tile, routed through the MXU per batch row
            # (TB is small).  Keeps the token block in its native dtype and
            # avoids the mask[:, :, None] lane->sublane relayout.
            mask_mm = mask.astype(tok_ref.dtype)
            rows = [jnp.dot(mask_mm[b:b + 1, :], tok_ref[b],
                            preferred_element_type=jnp.float32)
                    for b in range(tb)]
            sum_acc[...] += _stack_rows(rows)                  # (TB, D) f32
            cnt_acc[...] += jnp.sum(mask.astype(jnp.float32), axis=1,
                                    keepdims=True)             # (TB, 1)

        # ---- epilogue on the last sequence tile -----------------------------
        @pl.when(t == nt - 1)
        def _finalize():
            feats = []
            # Feature order matches the PyTorch module: [cls, max, mean].
            if use_cls:
                feats.append(cls_acc[...])
            if use_max:
                feats.append(max_acc[...])
            if use_mean:
                denom = jnp.maximum(cnt_acc[...], 1e-9)        # torch.clamp(min=1e-9)
                # Runs once per output tile (outside the hot T loop);
                # exact reciprocal keeps the numerical check tight.
                feats.append(sum_acc[...] * pl.reciprocal(denom, approx=False))
            pooled = feats[0] if len(feats) == 1 else jnp.concatenate(feats, axis=1)
            out = jnp.dot(pooled.astype(w_ref.dtype), w_ref[...],
                          preferred_element_type=jnp.float32)
            out = out + b_ref[...].astype(jnp.float32)
            out_ref[...] = out.astype(out_ref.dtype)

    return kernel


# ---------------------------------------------------------------------------
# Wrapper
# ---------------------------------------------------------------------------
def _pick_batch_tile(B: int) -> int:
    # Block second-to-last dims must be a multiple of 8 or the full dim.
    return 8 if B % 8 == 0 else B


def _pick_seq_tile(T: int, tb: int, d: int, itemsize: int,
                   budget_bytes: int = 4 << 20) -> int:
    # Candidates keep the mask block's last dim a multiple of 128 (or full T).
    # Pick the largest tile whose (double-buffered) token block fits a per-buffer
    # budget that is safe on v7x's 64 MiB VMEM as well as v5e/v6e.
    cands = [c for c in (1024, 512, 384, 256, 128) if T % c == 0]
    for c in cands:
        if tb * c * d * itemsize <= budget_bytes:
            return c
    if cands:
        return cands[-1]
    return T   # no 128-multiple divisor: single sequence tile


def pooling_forward(token_embeddings, input_mask, weight, bias,
                    pooling_mode_cls_token: bool = False,
                    pooling_mode_max_tokens: bool = False,
                    pooling_mode_mean_tokens: bool = True):
    """Pooling forward pass as a single fused Pallas TPU kernel."""
    B, T, D = token_embeddings.shape
    D_pooled, D_out = weight.shape
    mult = sum([pooling_mode_cls_token, pooling_mode_max_tokens,
                pooling_mode_mean_tokens])
    assert mult >= 1, "at least one pooling mode must be enabled"
    assert D_pooled == mult * D, "weight shape inconsistent with pooling modes"

    out_dtype = jnp.result_type(token_embeddings.dtype, weight.dtype)

    # Lane-dense output: pad D_out to a multiple of 128 so the final store is a
    # full (unmasked) vector store; zero padding is sliced off afterwards.
    Dp = max(128, ((D_out + 127) // 128) * 128)
    if Dp != D_out:
        weight = jnp.pad(weight, ((0, 0), (0, Dp - D_out)))
        bias = jnp.pad(bias, (0, Dp - D_out))
    bias2d = bias.reshape(1, Dp)

    tb = _pick_batch_tile(B)
    itemsize = jnp.dtype(token_embeddings.dtype).itemsize
    tt = _pick_seq_tile(T, tb, D, itemsize)
    nb, nt = B // tb, T // tt

    kernel = _make_pooling_kernel(pooling_mode_cls_token,
                                  pooling_mode_max_tokens,
                                  pooling_mode_mean_tokens, tb)

    # Explicit VMEM budget: 2x double-buffered input tiles + resident weight /
    # bias / output / scratch + headroom, clamped to stay v7x-safe (<=48 MiB).
    mask_isz = jnp.dtype(input_mask.dtype).itemsize
    w_isz = jnp.dtype(weight.dtype).itemsize
    per_buf = tb * tt * D * itemsize + tb * tt * mask_isz
    resident = (D_pooled * Dp * w_isz + Dp * w_isz + 2 * tb * Dp * 4
                + (3 * tb * D + tb) * 4)
    vmem_limit = int(min(48 << 20,
                         max(2 * per_buf + resident + (4 << 20), 16 << 20)))

    grid_spec = pltpu.PrefetchScalarGridSpec(
        num_scalar_prefetch=0,
        grid=(nb, nt),
        in_specs=[
            pl.BlockSpec((tb, tt, D), lambda i, t: (i, t, 0)),   # tokens
            pl.BlockSpec((tb, tt), lambda i, t: (i, t)),         # mask
            pl.BlockSpec((D_pooled, Dp), lambda i, t: (0, 0)),   # projection weight
            pl.BlockSpec((1, Dp), lambda i, t: (0, 0)),          # projection bias
        ],
        out_specs=pl.BlockSpec((tb, Dp), lambda i, t: (i, 0)),
        scratch_shapes=[
            pltpu.VMEM((tb, D), jnp.float32),   # cls token
            pltpu.VMEM((tb, D), jnp.float32),   # running max
            pltpu.VMEM((tb, D), jnp.float32),   # running masked sum
            pltpu.VMEM((tb, 1), jnp.float32),   # running token count
        ],
    )

    out_padded = pl.pallas_call(
        kernel,
        out_shape=jax.ShapeDtypeStruct((B, Dp), out_dtype),
        grid_spec=grid_spec,
        compiler_params=pltpu.CompilerParams(
            dimension_semantics=("parallel", "arbitrary"),
            vmem_limit_bytes=vmem_limit,
        ),
    )(token_embeddings, input_mask, weight, bias2d)

    return out_padded[:, :D_out]


# ---------------------------------------------------------------------------
# Pure-JAX reference (mirrors the PyTorch forward pass)
# ---------------------------------------------------------------------------
def pooling_reference(token_embeddings, input_mask, weight, bias,
                      pooling_mode_cls_token=False,
                      pooling_mode_max_tokens=False,
                      pooling_mode_mean_tokens=True):
    tok = token_embeddings.astype(jnp.float32)
    mask = input_mask.astype(jnp.float32)
    mask_e = mask[:, :, None]
    feats = []
    if pooling_mode_cls_token:
        feats.append(tok[:, 0, :])
    if pooling_mode_max_tokens:
        feats.append(jnp.max(jnp.where(mask_e == 0.0, -1e9, tok), axis=1))
    if pooling_mode_mean_tokens:
        sum_emb = jnp.sum(tok * mask_e, axis=1)
        sum_mask = jnp.maximum(jnp.sum(mask_e, axis=1), 1e-9)  # torch.clamp(min=1e-9)
        feats.append(sum_emb / sum_mask)
    pooled = jnp.concatenate(feats, axis=1)
    return jnp.dot(pooled, weight.astype(jnp.float32),
                   precision=jax.lax.Precision.HIGHEST) + bias.astype(jnp.float32)


if __name__ == "__main__":
    root = jax.random.PRNGKey(0)
    k_tok, k_w, k_b, k_tok2, k_w2, k_b2, k_len2 = jax.random.split(root, 7)

    def bf16_grid(x):
        # Snap test data onto bf16-representable values so the check is robust
        # to TPU matmul input-precision choices on either side.
        return x.astype(jnp.bfloat16).astype(x.dtype)

    # --- Test 1: module defaults (mean pooling only), small shapes ----------
    B, T, D, D_OUT = 2, 8, 32, 32
    tok = bf16_grid(jax.random.normal(k_tok, (B, T, D), dtype=jnp.float32))
    lengths = jnp.array([5, 8], dtype=jnp.int32)
    mask = (jnp.arange(T)[None, :] < lengths[:, None]).astype(jnp.float32)
    # init_module_weights(linear, 0.1) -> uniform in [-0.1, 0.1]
    w = bf16_grid(jax.random.uniform(k_w, (D, D_OUT), minval=-0.1, maxval=0.1,
                                     dtype=jnp.float32))
    b = bf16_grid(jax.random.uniform(k_b, (D_OUT,), minval=-0.1, maxval=0.1,
                                     dtype=jnp.float32))

    out = jax.block_until_ready(pooling_forward(tok, mask, w, b))
    ref = pooling_reference(tok, mask, w, b)
    assert out.shape == (B, D_OUT)
    assert jnp.allclose(out.astype(jnp.float32), ref, atol=2e-3, rtol=2e-3), \
        float(jnp.max(jnp.abs(out.astype(jnp.float32) - ref)))

    # --- Test 2: cls+max+mean, bf16 tokens, multi-tile sequence reduction ---
    B2, T2, D2, D_OUT2 = 8, 256, 64, 48
    tok2 = jax.random.normal(k_tok2, (B2, T2, D2),
                             dtype=jnp.float32).astype(jnp.bfloat16)
    lengths2 = jax.random.randint(k_len2, (B2,), minval=1, maxval=T2 + 1)
    mask2 = (jnp.arange(T2)[None, :] < lengths2[:, None]).astype(jnp.float32)
    w2 = bf16_grid(jax.random.uniform(k_w2, (3 * D2, D_OUT2), minval=-0.1,
                                      maxval=0.1, dtype=jnp.float32))
    b2 = bf16_grid(jax.random.uniform(k_b2, (D_OUT2,), minval=-0.1, maxval=0.1,
                                      dtype=jnp.float32))

    out2 = jax.block_until_ready(
        pooling_forward(tok2, mask2, w2, b2,
                        pooling_mode_cls_token=True,
                        pooling_mode_max_tokens=True,
                        pooling_mode_mean_tokens=True))
    ref2 = pooling_reference(tok2, mask2, w2, b2,
                             pooling_mode_cls_token=True,
                             pooling_mode_max_tokens=True,
                             pooling_mode_mean_tokens=True)
    assert out2.shape == (B2, D_OUT2)
    assert jnp.allclose(out2.astype(jnp.float32), ref2, atol=2e-3, rtol=2e-3), \
        float(jnp.max(jnp.abs(out2.astype(jnp.float32) - ref2)))

    print("KERNEL_OK")
</pallas_src>

<mosaic_0001>
module attributes {stable_mosaic.version = 11 : i64} {
  func.func @kernel(%arg0: i32, %arg1: i32, %arg2: memref<2x8x32xf32, #tpu.memory_space<vmem>>, %arg3: memref<2x8xf32, #tpu.memory_space<vmem>>, %arg4: memref<32x128xf32, #tpu.memory_space<vmem>>, %arg5: memref<1x128xf32, #tpu.memory_space<vmem>>, %arg6: memref<2x128xf32, #tpu.memory_space<vmem>>, %arg7: memref<2x32xf32, #tpu.memory_space<vmem>>, %arg8: memref<2x32xf32, #tpu.memory_space<vmem>>, %arg9: memref<2x32xf32, #tpu.memory_space<vmem>>, %arg10: memref<2x1xf32, #tpu.memory_space<vmem>>) attributes {dimension_semantics = [#tpu.dimension_semantics<parallel>, #tpu.dimension_semantics<arbitrary>], iteration_bounds = array<i64: 1, 1>, scalar_prefetch = 0 : i64, scratch_operands = 4 : i64, tpu.core_type = #tpu.core_type<tc>, window_params = [{transform_indices = @transform_0, window_bounds = array<i64: 2, 8, 32>}, {transform_indices = @transform_1, window_bounds = array<i64: 2, 8>}, {pipeline_mode = #tpu.pipeline_mode<synchronous>, transform_indices = @transform_2, window_bounds = array<i64: 32, 128>}, {pipeline_mode = #tpu.pipeline_mode<synchronous>, transform_indices = @transform_3, window_bounds = array<i64: 1, 128>}, {transform_indices = @transform_4, window_bounds = array<i64: 2, 128>}]} {
    %c0_i32 = arith.constant 0 : i32
    %0 = arith.cmpi eq, %arg1, %c0_i32 : i32
    %1 = arith.extui %0 : i1 to i32
    %c0_i32_0 = arith.constant 0 : i32
    %2 = arith.cmpi ne, %1, %c0_i32_0 : i32
    scf.if %2 {
      %cst_19 = arith.constant 0.000000e+00 : f32
      %24 = vector.broadcast %cst_19 : f32 to vector<2x32xf32>
      %c0_20 = arith.constant 0 : index
      %c0_21 = arith.constant 0 : index
      %25 = vector.load %arg9[%c0_20, %c0_21] : memref<2x32xf32, #tpu.memory_space<vmem>>, vector<2x32xf32>
      tpu.vector_store %arg9[%c0_20, %c0_21], %24 {strides = array<i32>} : memref<2x32xf32, #tpu.memory_space<vmem>>, vector<2x32xf32>,
      %cst_22 = arith.constant 0.000000e+00 : f32
      %26 = vector.broadcast %cst_22 : f32 to vector<2x1xf32>
      %c0_23 = arith.constant 0 : index
      %c0_24 = arith.constant 0 : index
      %27 = vector.load %arg10[%c0_23, %c0_24] : memref<2x1xf32, #tpu.memory_space<vmem>>, vector<2x1xf32>
      tpu.vector_store %arg10[%c0_23, %c0_24], %26 {strides = array<i32>} : memref<2x1xf32, #tpu.memory_space<vmem>>, vector<2x1xf32>,
    } else {
    }
    %c0 = arith.constant 0 : index
    %c0_1 = arith.constant 0 : index
    %3 = vector.load %arg3[%c0, %c0_1] : memref<2x8xf32, #tpu.memory_space<vmem>>, vector<2x8xf32>
    %4 = vector.extract_strided_slice %3 {offsets = [0, 0], sizes = [1, 8], strides = [1, 1]} : vector<2x8xf32> to vector<1x8xf32>
    %c0_2 = arith.constant 0 : index
    %c0_3 = arith.constant 0 : index
    %c0_4 = arith.constant 0 : index
    %5 = vector.load %arg2[%c0_2, %c0_3, %c0_4] : memref<2x8x32xf32, #tpu.memory_space<vmem>>, vector<1x8x32xf32>
    %6 = vector.shape_cast %5 : vector<1x8x32xf32> to vector<8x32xf32>
    %cst = arith.constant dense<0.000000e+00> : vector<1x32xf32>
    %7 = tpu.matmul %4, %6, %cst {dimension_numbers = #tpu.dot_dimension_numbers<[1], [0], [0], [1], [0, 0, 1, 1], [], []>} : vector<1x8xf32>, vector<8x32xf32>, vector<1x32xf32> -> vector<1x32xf32>
    %8 = vector.extract_strided_slice %3 {offsets = [1, 0], sizes = [1, 8], strides = [1, 1]} : vector<2x8xf32> to vector<1x8xf32>
    %c1 = arith.constant 1 : index
    %c0_5 = arith.constant 0 : index
    %c0_6 = arith.constant 0 : index
    %9 = vector.load %arg2[%c1, %c0_5, %c0_6] : memref<2x8x32xf32, #tpu.memory_space<vmem>>, vector<1x8x32xf32>
    %10 = vector.shape_cast %9 : vector<1x8x32xf32> to vector<8x32xf32>
    %cst_7 = arith.constant dense<0.000000e+00> : vector<1x32xf32>
    %11 = tpu.matmul %8, %10, %cst_7 {dimension_numbers = #tpu.dot_dimension_numbers<[1], [0], [0], [1], [0, 0, 1, 1], [], []>} : vector<1x8xf32>, vector<8x32xf32>, vector<1x32xf32> -> vector<1x32xf32>
    %c0_8 = arith.constant 0 : index
    %c0_9 = arith.constant 0 : index
    %12 = vector.load %arg9[%c0_8, %c0_9] : memref<2x32xf32, #tpu.memory_space<vmem>>, vector<2x32xf32>
    %13 = tpu.concatenate %7, %11 in 0 : vector<1x32xf32>, vector<1x32xf32> -> vector<2x32xf32>
    %14 = arith.addf %12, %13 : vector<2x32xf32>
    %c0_10 = arith.constant 0 : index
    %c0_11 = arith.constant 0 : index
    %15 = vector.load %arg9[%c0_10, %c0_11] : memref<2x32xf32, #tpu.memory_space<vmem>>, vector<2x32xf32>
    tpu.vector_store %arg9[%c0_10, %c0_11], %14 {strides = array<i32>} : memref<2x32xf32, #tpu.memory_space<vmem>>, vector<2x32xf32>,
    %c0_12 = arith.constant 0 : index
    %c0_13 = arith.constant 0 : index
    %16 = vector.load %arg10[%c0_12, %c0_13] : memref<2x1xf32, #tpu.memory_space<vmem>>, vector<2x1xf32>
    %cst_14 = arith.constant dense<0.000000e+00> : vector<2xf32>
    %17 = vector.multi_reduction <add>, %3, %cst_14 [1] : vector<2x8xf32> to vector<2xf32>
    %18 = vector.shape_cast %17 : vector<2xf32> to vector<2x1xf32>
    %19 = arith.addf %16, %18 : vector<2x1xf32>
    %c0_15 = arith.constant 0 : index
    %c0_16 = arith.constant 0 : index
    %20 = vector.load %arg10[%c0_15, %c0_16] : memref<2x1xf32, #tpu.memory_space<vmem>>, vector<2x1xf32>
    tpu.vector_store %arg10[%c0_15, %c0_16], %19 {strides = array<i32>} : memref<2x1xf32, #tpu.memory_space<vmem>>, vector<2x1xf32>,
    %c0_i32_17 = arith.constant 0 : i32
    %21 = arith.cmpi eq, %arg1, %c0_i32_17 : i32
    %22 = arith.extui %21 : i1 to i32
    %c0_i32_18 = arith.constant 0 : i32
    %23 = arith.cmpi ne, %22, %c0_i32_18 : i32
    scf.if %23 {
      %c0_19 = arith.constant 0 : index
      %c0_20 = arith.constant 0 : index
      %24 = vector.load %arg10[%c0_19, %c0_20] : memref<2x1xf32, #tpu.memory_space<vmem>>, vector<2x1xf32>
      %cst_21 = arith.constant 9.99999971E-10 : f32
      %25 = vector.broadcast %cst_21 : f32 to vector<2x1xf32>
      %26 = arith.maximumf %24, %25 : vector<2x1xf32>
      %c0_22 = arith.constant 0 : index
      %c0_23 = arith.constant 0 : index
      %27 = vector.load %arg9[%c0_22, %c0_23] : memref<2x32xf32, #tpu.memory_space<vmem>>, vector<2x32xf32>
      %28 = tpu.reciprocal %26 : vector<2x1xf32> -> vector<2x1xf32>
      %29 = vector.broadcast %28 : vector<2x1xf32> to vector<2x32xf32>
      %30 = arith.mulf %27, %29 : vector<2x32xf32>
      %c0_24 = arith.constant 0 : index
      %c0_25 = arith.constant 0 : index
      %31 = vector.load %arg4[%c0_24, %c0_25] : memref<32x128xf32, #tpu.memory_space<vmem>>, vector<32x128xf32>
      %cst_26 = arith.constant dense<0.000000e+00> : vector<2x128xf32>
      %32 = tpu.matmul %30, %31, %cst_26 {dimension_numbers = #tpu.dot_dimension_numbers<[1], [0], [0], [1], [0, 0, 1, 1], [], []>} : vector<2x32xf32>, vector<32x128xf32>, vector<2x128xf32> -> vector<2x128xf32>
      %c0_27 = arith.constant 0 : index
      %c0_28 = arith.constant 0 : index
      %33 = vector.load %arg5[%c0_27, %c0_28] : memref<1x128xf32, #tpu.memory_space<vmem>>, vector<1x128xf32>
      %34 = vector.broadcast %33 : vector<1x128xf32> to vector<2x128xf32>
      %35 = arith.addf %32, %34 : vector<2x128xf32>
      %c0_29 = arith.constant 0 : index
      %c0_30 = arith.constant 0 : index
      %36 = vector.load %arg6[%c0_29, %c0_30] : memref<2x128xf32, #tpu.memory_space<vmem>>, vector<2x128xf32>
      tpu.vector_store %arg6[%c0_29, %c0_30], %35 {strides = array<i32>} : memref<2x128xf32, #tpu.memory_space<vmem>>, vector<2x128xf32>,
    } else {
    }
    return
  }
  func.func @transform_0(%arg0: i32, %arg1: i32) -> (i32, i32, i32) {
    %c0_i32 = arith.constant 0 : i32
    %c0_i32_0 = arith.constant 0 : i32
    return %arg0, %arg1, %c0_i32 : i32, i32, i32
  }
  func.func @transform_1(%arg0: i32, %arg1: i32) -> (i32, i32) {
    %c0_i32 = arith.constant 0 : i32
    return %arg0, %arg1 : i32, i32
  }
  func.func @transform_2(%arg0: i32, %arg1: i32) -> (i32, i32) {
    %c0_i32 = arith.constant 0 : i32
    %c0_i32_0 = arith.constant 0 : i32
    %c0_i32_1 = arith.constant 0 : i32
    return %c0_i32, %c0_i32_0 : i32, i32
  }
  func.func @transform_3(%arg0: i32, %arg1: i32) -> (i32, i32) {
    %c0_i32 = arith.constant 0 : i32
    %c0_i32_0 = arith.constant 0 : i32
    %c0_i32_1 = arith.constant 0 : i32
    return %c0_i32, %c0_i32_0 : i32, i32
  }
  func.func @transform_4(%arg0: i32, %arg1: i32) -> (i32, i32) {
    %c0_i32 = arith.constant 0 : i32
    %c0_i32_0 = arith.constant 0 : i32
    return %arg0, %c0_i32 : i32, i32
  }
}

</mosaic_0001>

<bundles_post_ra>
// kernel: tpu_custom_call.1
= control target key start
LH: loop header
LB: loop body
LE: loop exit
PB: predicated region body
PF: predicated region fallthrough
CT: control target
= control target key end

     0   :  { %9 = vsyncpa [#allocation7], 0  ;;  %s536_s0 = inlined_call_operand.hbm [shape: f32[2,8,32], index: 0, kind: input, shape index: {}]   ;;  %s537_s1 = inlined_call_operand.hbm [shape: f32[2,8], index: 1, kind: input, shape index: {}]   ;;  %s538_s2 = inlined_call_operand.hbm [shape: f32[32,128], index: 2, kind: input, shape index: {}]   ;;  %s539_s3 = inlined_call_operand.vmem [shape: f32[1,128], index: 3, kind: input, shape index: {}]   ;;  %s540_s4 = inlined_call_operand.hbm [shape: f32[2,128], index: 4, kind: output, shape index: {}]  }
   0x1   :  { %10 = vsyncpa [#allocation10], 0 }
   0x2   :  { %11 = vsyncpa [#allocation8], 0  ;;  %s480_s15 = smov [#allocation9]   ;;  %s481_s17 = smov [#allocation6]  }
   0x3   :  { %s30_s16 = sshll.u32 %s480_s15, 4  ;;  %s17_s18 = sshll.u32 %s481_s17, 4  ;;  %s31_s16 = int_to_ptr.vmem [resolvable:$true] %s30_s16  ;;  %s18_s18 = int_to_ptr.vmem [resolvable:$true] %s17_s18 }
   0x4   :  { %s402_s19 = scalar_lea.vmem %s31_s16, 32  ;;  %p407_p1 = scmp.lt.s32.totalorder %s31_s16, %s31_s16 }
   0x5   :  { %p403_p0 = scmp.ne.s32.totalorder %s31_s16, %s402_s19  ;;  %p408_p2 = scmp.lt.s32.totalorder %s402_s19, %s402_s19 }
   0x7   :  { %p409_p3 = por %p408_p2, %p407_p1 }
   0x9   :  { %p410_p4 = pnand %p409_p3, %p403_p0 }
   0xb   :  { %413 = shalt.err (!%p410_p4)
}
   0xc   :  { %33 = dma.hbm_to_vmem [thread:$0]  %s537_s1, 32, %s31_s16, [#allocation10]  }
   0xd   :  { %s422_s22 = scalar_lea.vmem %s18_s18, 256  ;;  %p427_p6 = scmp.lt.s32.totalorder %s18_s18, %s18_s18 }
   0xe   :  { %p423_p5 = scmp.ne.s32.totalorder %s18_s18, %s422_s22  ;;  %p428_p7 = scmp.lt.s32.totalorder %s422_s22, %s422_s22 }
  0x10   :  { %p429_p8 = por %p428_p7, %p427_p6 }
  0x12   :  { %p430_p9 = pnand %p429_p8, %p423_p5 }
  0x14   :  { %433 = shalt.err (!%p430_p9)
}
  0x15   :  { %s482_s23 = smov 128   ;;  %s483_s24 = smov 8  }
  0x16   :  { %23 = dma.hbm_to_vmem [thread:$0]  %s536_s0, 256, %s18_s18, [#allocation7], %s482_s23, %s482_s23, %s483_s24  }
  0x17   :  { %s484_s27 = smov [#allocation11]  }
  0x18   :  { %s39_s28 = sshll.u32 %s484_s27, 4  ;;  %s40_s28 = int_to_ptr.vmem [resolvable:$true] %s39_s28 }
  0x19   :  { %s442_s29 = scalar_lea.vmem %s40_s28, 512  ;;  %p447_p11 = scmp.lt.s32.totalorder %s40_s28, %s40_s28 }
  0x1a   :  { %p443_p10 = scmp.ne.s32.totalorder %s40_s28, %s442_s29  ;;  %p448_p12 = scmp.lt.s32.totalorder %s442_s29, %s442_s29 }
  0x1c   :  { %p449_p13 = por %p448_p12, %p447_p11 }
  0x1e   :  { %p450_p0 = pnand %p449_p13, %p443_p10 }
  0x20   :  { %453 = shalt.err (!%p450_p0)
}
  0x21   :  { %45 = dma.hbm_to_vmem [thread:$0]  %s538_s2, 512, %s40_s28, [#allocation10], %s482_s23, %s482_s23, %s483_s24  }
  0x22   :  { %474 = dma.done.wait [#allocation7], 256  }
  0x23   :  { %475 = vsyncadd [#allocation7], 4294967040 }
  0x24   :  { %476 = dma.done.wait [#allocation10], 544  }
  0x25   :  { %477 = vsyncadd [#allocation10], 4294966752  ;;  %v485_v0 = vmov 0.0   ;;  %vm486_vm0 = vmmov 0   ;;  %vm63_vm1 = vcmask 1024   ;;  %vm226_vm2 = vcmask 58368  }
  0x26   :  { %361 = vmatprep.subr.mxu1 %v485_v0  ;;  %363 = vmatprep.mubr.msk.f32.mxu1 %vm486_vm0, %v485_v0  ;;  %64 = vst.msk [vmem:[#allocation5] sm:$0x3] %vm63_vm1, %v485_v0  ;;  %vm67_vm3 = vcmask 64512   ;;  %v65_v1 = vld [vmem:[#allocation9] sm:$0x3]  ;;  %v66_v2 = vld [vmem:[#allocation6] sm:$0xff] }
  0x27   :  { %371 = vmatprep.subr.mxu0 %v485_v0  ;;  %379 = vmatprep.mubr.msk.f32.mxu0 %vm486_vm0, %v485_v0  ;;  %v227_v3 = vsel %vm226_vm2, %v65_v1, 0.0  ;;  %v142_v4 = vld [vmem:[#allocation6 + $0x8] sm:$0xff]  ;;  %v143_v5 = vrot.slane %v65_v1, 1  ;;  %v487_v6 = vmov 0   ;;  %vm61_vm4 = vcmask 254976   ;;  %v247_v9 = vld [vmem:[#allocation11 + $0x8] sm:$0xff] }
  0x28   :  { %362 = vmatpush3.msra.mxu1 %v66_v2  ;;  %228 = vadd.xlane.f32.xlu0 %v227_v3  ;;  %62 = vst.msk [vmem:[#allocation4] sm:$0x3] %vm61_vm4, %v485_v0  ;;  %v249_v7 = vld [vmem:[#allocation11 + $0x18] sm:$0xff]  ;;  %v248_v8 = vld [vmem:[#allocation11 + $0x10] sm:$0xff]  ;;  %v246_v15 = vld [vmem:[#allocation11] sm:$0xff]  ;;  %vm220_vm5 = vcmask 1040384  }
  0x29   :  { %364 = vmatmul.mubr.msk.f32.vlgmr.msra.gmra.mxu1 %vm67_vm3, %v65_v1  ;;  %366 = vmatprep.subr.mxu1 %v485_v0  ;;  %vm257_vm6 = vcmask 261120   ;;  %v350_v28 = vld [vmem:[%s539_s3] ss:$0 sm:$0xff]  ;;  %s488_s5 = smov [#allocation12]  }
  0x2a   :  { %368 = vmatprep.mubr.msk.f32.mxu1 %vm486_vm0, %v485_v0  ;;  %367 = vmatpush3.msra.mxu1 %v142_v4  ;;  %s338_s6 = sshll.u32 %s488_s5, 4  ;;  %s339_s6 = int_to_ptr.vmem [resolvable:$true] %s338_s6 }
  0x2b   :  { %391 = vset.pattern.permute.xlu0 %v487_v6  ;;  %372 = vmatpush3.msra.mxu0 %v249_v7  ;;  %s454_s7 = scalar_lea.vmem %s339_s6, 32  ;;  %p459_p2 = scmp.lt.s32.totalorder %s339_s6, %s339_s6 }
  0x2c   :  { %373 = vmatprep.subr.mxu0 %v485_v0  ;;  %p455_p1 = scmp.ne.s32.totalorder %s339_s6, %s454_s7  ;;  %p460_p3 = scmp.lt.s32.totalorder %s454_s7, %s454_s7 }
  0x2d   :  { %369 = vmatmul.mubr.msk.f32.vlgmr.msra.gmra.mxu1 %vm67_vm3, %v143_v5  ;;  %374 = vmatpush3.msra.mxu0 %v248_v8  ;;  %v225_v10 = vld [vmem:[#allocation5] sm:$0x3] }
  0x2e   :  { %375 = vmatprep.subr.mxu0 %v485_v0  ;;  %p461_p4 = por %p460_p3, %p459_p2 }
  0x2f   :  { %376 = vmatpush3.msra.mxu0 %v247_v9  ;;  %v216_v20 = vld [vmem:[#allocation4] sm:$0x3] }
  0x30   :  { %377 = vmatprep.subr.mxu0 %v485_v0  ;;  %p462_p5 = pnand %p461_p4, %p455_p1 }
  0x31   :  { %378 = vmatpush3.msra.mxu0 %v246_v15 }
  0xb1   :  { %v229_v11 = vpop.xlane.xlu0 %228 }
  0xb2   :  { %v230_v12 = vadd.f32 %v229_v11, %v225_v10 }
  0xb4   :  { %232 = vst.msk [vmem:[#allocation5] sm:$0x3] %vm63_vm1, %v230_v12 }
  0xbb   :  { %v236_v13 = vld [vmem:[#allocation5] sm:$0x3] }
  0xbc   :  { %v237_v14 = vmax.f32 %v236_v13, 1e-09 }
  0xbe   :  { %392 = vrcp.f32 %v237_v14 }
  0xcb   :  { %v393_v16 = vpop.eup %392 }
  0xcc   :  { %242 = vperm.xlu0 %391, %v393_v16  }
  0xe9   :  { %v137_v17 = vpop.f32.mrf.mxu1 }
  0xeb   :  { %v365_v18 = vpop.f32.mrf.mxu1 }
  0xed   :  { %v212_v19 = vpop.f32.mrf.mxu1 }
  0xee   :  { %v218_v21 = vrot.slane %v212_v19, 7 }
  0xef   :  { %v370_v22 = vpop.f32.mrf.mxu1 }
  0xf0   :  { %v221_v23 = vsel %vm220_vm5, %v137_v17, %v218_v21 }
  0xf1   :  { %v222_v24 = vadd.f32 %v221_v23, %v216_v20 }
  0xf3   :  { %224 = vst.msk [vmem:[#allocation4] sm:$0x3] %vm61_vm4, %v222_v24 }
  0xfa   :  { %v238_v26 = vld [vmem:[#allocation4] sm:$0x3] }
 0x147   :  { %v243_v25 = vpop.permute.xlu0 %242 }
 0x148   :  { %v245_v27 = vmul.f32 %v243_v25, %v238_v26 }
 0x14a   :  { %380 = vmatmul.mubr.msk.f32.vlgmr.msra.gmra.mxu0 %vm257_vm6, %v245_v27 }
 0x20a   :  { %v327_v29 = vpop.f32.mrf.mxu0 }
 0x20b   :  { %v328_v30 = vadd.f32 %v350_v28, %v327_v29 }
 0x20c   :  { %v381_v31 = vpop.f32.mrf.mxu0 }
 0x20d   :  { %331 = vst [vmem:[#allocation12] sm:$0x3] %v328_v30 }
 0x20e   :  { %465 = shalt.err (!%p462_p5)
}
 0x20f   :  { %341 = dma.vmem_to_hbm [thread:$0]  %s339_s6, 32, %s540_s4, [#allocation8]  }
 0x210   :  { %478 = dma.done.wait [#allocation8], 32  }
 0x211   :  { %479 = vsyncadd [#allocation8], 4294967264 }
 0x212   :  { %345 = vsyncpa [#allocation7], 1 }
 0x213   :  { %346 = vsyncpa [#allocation10], 1 }
 0x214   :  { %347 = vsyncpa [#allocation8], 1 }

</bundles_post_ra>
